<compile_context>
chip_gen: v7x
topology: tpu7x:2x2x1
jax: 0.10.0
libtpu: 0.0.40
codegen_flags: <defaults>
</compile_context>

<pallas_src>
import jax
import jax.numpy as jnp
from jax.experimental import pallas as pl
from jax.experimental.pallas import tpu as pltpu  # noqa: F401  (TPU backend)


def _round_up(n, m):
    return ((n + m - 1) // m) * m


# ----------------------------------------------------------------------------
# Kernel 1: y = LeakyReLU_0.1(x @ w + b)      (used for the 1x1 conv, down0)
# ----------------------------------------------------------------------------
def _mm_bias_lrelu_kernel(x_ref, w_ref, b_ref, o_ref):
    acc = jnp.dot(x_ref[...], w_ref[...], preferred_element_type=jnp.float32)
    acc = acc + b_ref[...]
    o_ref[...] = jnp.where(acc >= 0.0, acc, 0.1 * acc).astype(o_ref.dtype)


def _mm_bias_lrelu(x, w, b):
    M, K = x.shape
    _, N = w.shape
    Kp = _round_up(K, 128)
    if Kp != K:
        x = jnp.pad(x, ((0, 0), (0, Kp - K)))
        w = jnp.pad(w, ((0, Kp - K), (0, 0)))
    return pl.pallas_call(
        _mm_bias_lrelu_kernel,
        out_shape=jax.ShapeDtypeStruct((M, N), x.dtype),
        grid=(1,),
        in_specs=[pl.BlockSpec((M, Kp), lambda i: (0, 0)),
                  pl.BlockSpec((Kp, N), lambda i: (0, 0)),
                  pl.BlockSpec((1, N), lambda i: (0, 0))],
        out_specs=pl.BlockSpec((M, N), lambda i: (0, 0)),
    )(x, w, b.reshape(1, N))


# ----------------------------------------------------------------------------
# Kernel 2: conv-as-matmul (no bias) + BatchNorm1d (batch stats) + LeakyReLU
#   x: (B*L_out, K*C_in) im2col patches, w: (K*C_in, C_out)
#   BN stats are per output channel over all B*L_out rows == BatchNorm1d
#   training-mode semantics (biased variance, eps=1e-5).
# ----------------------------------------------------------------------------
def _conv_bn_lrelu_kernel(x_ref, w_ref, g_ref, b_ref, o_ref):
    acc = jnp.dot(x_ref[...], w_ref[...], preferred_element_type=jnp.float32)
    mean = jnp.mean(acc, axis=0, keepdims=True)
    d = acc - mean
    var = jnp.mean(d * d, axis=0, keepdims=True)
    y = d * jax.lax.rsqrt(var + 1e-5) * g_ref[...] + b_ref[...]
    o_ref[...] = jnp.where(y >= 0.0, y, 0.1 * y).astype(o_ref.dtype)


def _conv_bn_lrelu(x, w, gamma, beta):
    M, K = x.shape                      # K = 6*64 = 384 (already lane aligned)
    _, N = w.shape
    return pl.pallas_call(
        _conv_bn_lrelu_kernel,
        out_shape=jax.ShapeDtypeStruct((M, N), x.dtype),
        grid=(1,),
        in_specs=[pl.BlockSpec((M, K), lambda i: (0, 0)),
                  pl.BlockSpec((K, N), lambda i: (0, 0)),
                  pl.BlockSpec((1, N), lambda i: (0, 0)),
                  pl.BlockSpec((1, N), lambda i: (0, 0))],
        out_specs=pl.BlockSpec((M, N), lambda i: (0, 0)),
    )(x, w, gamma.reshape(1, N), beta.reshape(1, N))


# ----------------------------------------------------------------------------
# Kernel 3: fused head -- mean = h@Wmu+bmu, log_var = h@Wsig+bsig,
#           std = exp(0.5*log_var), out = mean + std*eps
# ----------------------------------------------------------------------------
def _head_kernel(h_ref, wmu_ref, bmu_ref, wsig_ref, bsig_ref, eps_ref,
                 out_ref, mean_ref, std_ref):
    h = h_ref[...]
    mean = jnp.dot(h, wmu_ref[...], preferred_element_type=jnp.float32) + bmu_ref[...]
    log_var = jnp.dot(h, wsig_ref[...], preferred_element_type=jnp.float32) + bsig_ref[...]
    std = jnp.exp(0.5 * log_var)
    mean_ref[...] = mean.astype(mean_ref.dtype)
    std_ref[...] = std.astype(std_ref.dtype)
    out_ref[...] = (mean + std * eps_ref[...]).astype(out_ref.dtype)


def _head(h, wmu, bmu, wsig, bsig, eps):
    B, K = h.shape
    _, N = wmu.shape
    Kp = _round_up(K, 128)
    if Kp != K:
        h = jnp.pad(h, ((0, 0), (0, Kp - K)))
        wmu = jnp.pad(wmu, ((0, Kp - K), (0, 0)))
        wsig = jnp.pad(wsig, ((0, Kp - K), (0, 0)))
    out_shapes = (jax.ShapeDtypeStruct((B, N), h.dtype),) * 3
    return pl.pallas_call(
        _head_kernel,
        out_shape=out_shapes,
        grid=(1,),
        in_specs=[pl.BlockSpec((B, Kp), lambda i: (0, 0)),
                  pl.BlockSpec((Kp, N), lambda i: (0, 0)),
                  pl.BlockSpec((1, N), lambda i: (0, 0)),
                  pl.BlockSpec((Kp, N), lambda i: (0, 0)),
                  pl.BlockSpec((1, N), lambda i: (0, 0)),
                  pl.BlockSpec((B, N), lambda i: (0, 0))],
        out_specs=(pl.BlockSpec((B, N), lambda i: (0, 0)),) * 3,
    )(h, wmu, bmu.reshape(1, N), wsig, bsig.reshape(1, N), eps)


# ----------------------------------------------------------------------------
# JAX-side layout helpers (cheap data movement only)
# ----------------------------------------------------------------------------
def _im2col(xp, k, stride):
    """xp: (B, L_pad, C) channels-last.  Returns (B, L_out, k*C), k-major."""
    B, Lp, C = xp.shape
    L_out = (Lp - k) // stride + 1
    cols = [xp[:, i:i + stride * (L_out - 1) + 1:stride, :] for i in range(k)]
    pat = jnp.stack(cols, axis=2)              # (B, L_out, k, C)
    return pat.reshape(B, L_out, k * C)


def _netdown(h, p):
    """One NetDown block (batchnorm path), channels-last input (B, L, C)."""
    B, L, C = h.shape
    # Conv1d(C, C, k=6, s=1, pad=3, reflect, bias=False) + BN + LeakyReLU(0.1)
    xp = jnp.pad(h, ((0, 0), (3, 3), (0, 0)), mode="reflect")
    pat = _im2col(xp, 6, 1)                    # (B, L+1, 6C)
    L1 = pat.shape[1]
    y = _conv_bn_lrelu(pat.reshape(B * L1, 6 * C), p["w1"], p["g1"], p["be1"])
    y = y.reshape(B, L1, C)
    # Conv1d(C, C, k=6, s=2, pad=2, reflect, bias=False) + BN + LeakyReLU(0.1)
    xp = jnp.pad(y, ((0, 0), (2, 2), (0, 0)), mode="reflect")
    pat = _im2col(xp, 6, 2)                    # (B, L//2, 6C)
    L2 = pat.shape[1]
    y = _conv_bn_lrelu(pat.reshape(B * L2, 6 * C), p["w2"], p["g2"], p["be2"])
    return y.reshape(B, L2, C)


# ----------------------------------------------------------------------------
# Extractor1 (JAX/Pallas)
# ----------------------------------------------------------------------------
class Extractor1:
    def __init__(self, key, h_size=128, d=16, c_size=3, echannels=23, T=5):
        self.c_size = c_size
        self.h_size = h_size
        C0 = echannels * T          # 115
        C = d * 4                   # 64
        Kf = 1536 + c_size          # hard-wired by the reference fc layers
        keys = jax.random.split(key, 14)
        f32 = jnp.float32
        self.w0 = jax.random.normal(keys[0], (C0, C), f32) * 0.05
        self.b0 = jax.random.normal(keys[1], (C,), f32) * 0.05
        self.blocks = []
        for i in range(4):
            k1, k2 = jax.random.split(keys[2 + i], 2)
            # weights stored as (K, C_in, C_out) -> reshape to (K*C_in, C_out),
            # matching the k-major / c-minor im2col patch layout.
            w1 = jax.random.normal(k1, (6, C, C), f32) * 0.05
            w2 = jax.random.normal(k2, (6, C, C), f32) * 0.05
            self.blocks.append(dict(
                w1=w1.reshape(6 * C, C), g1=jnp.ones((C,), f32), be1=jnp.zeros((C,), f32),
                w2=w2.reshape(6 * C, C), g2=jnp.ones((C,), f32), be2=jnp.zeros((C,), f32),
            ))
        self.wmu = jax.random.normal(keys[6], (Kf, h_size), f32) * 0.02
        self.bmu = jax.random.normal(keys[7], (h_size,), f32) * 0.02
        self.wsig = jax.random.normal(keys[8], (Kf, h_size), f32) * 0.02
        self.bsig = jax.random.normal(keys[9], (h_size,), f32) * 0.02

    def __call__(self, x_T, key, c):
        # TODO(synk): torch's `device` argument has no JAX equivalent; a PRNG
        # key is taken instead (used for the eps ~ N(0,1) reparameterization).
        h = jnp.concatenate(x_T, axis=1)           # (B, echannels*T, L)
        B = h.shape[0]
        h = jnp.transpose(h, (0, 2, 1))            # channels-last (B, L, C0)
        L = h.shape[1]
        # netE1_down0: 1x1 conv + bias + LeakyReLU(0.1)
        h = _mm_bias_lrelu(h.reshape(B * L, h.shape[2]), self.w0, self.b0)
        h = h.reshape(B, L, -1)
        # netE1_down1..4 (batchnorm path: std=False, spectralnorm=False)
        for p in self.blocks:
            h = _netdown(h, p)
        # torch.flatten(h, start_dim=1) on (B, C, L): channel-major flatten.
        h = jnp.transpose(h, (0, 2, 1)).reshape(B, -1)   # (B, 1536)
        if self.c_size > 0:
            h = jnp.concatenate([h, c], axis=1)          # (B, 1536 + c_size)
        eps = jax.random.normal(key, (B, self.h_size), dtype=h.dtype)
        out, mean, std = _head(h, self.wmu, self.bmu, self.wsig, self.bsig, eps)
        return out, mean, std


if __name__ == "__main__":
    key = jax.random.PRNGKey(0)
    k_model, k_data, k_c, k_eps = jax.random.split(key, 4)

    # Shapes implied by the module: echannels=23, T=5, c_size=3.  The flatten
    # size 1536 = 64*24 forces the sequence length L = 24 * 2^4 = 384.
    B, echannels, T, L = 2, 23, 5, 384
    model = Extractor1(k_model)

    x_T = [jax.random.normal(jax.random.fold_in(k_data, t),
                             (B, echannels, L), jnp.float32) for t in range(T)]
    c = jax.random.normal(k_c, (B, 3), jnp.float32)

    h, mean, std = model(x_T, k_eps, c)
    h = jax.block_until_ready(h)
    mean = jax.block_until_ready(mean)
    std = jax.block_until_ready(std)

    assert h.shape == (B, 128) and mean.shape == (B, 128) and std.shape == (B, 128)
    assert h.dtype == jnp.float32
    assert bool(jnp.all(jnp.isfinite(h)))
    assert bool(jnp.all(jnp.isfinite(mean)))
    assert bool(jnp.all(std > 0.0))
    # Reparameterization consistency: h == mean + std * eps
    eps_ref = jax.random.normal(k_eps, (B, 128), jnp.float32)
    assert bool(jnp.allclose(h, mean + std * eps_ref, rtol=1e-5, atol=1e-5))

    print("KERNEL_OK")
</pallas_src>

<mosaic_0001>
module attributes {stable_mosaic.version = 11 : i64} {
  func.func @_mm_bias_lrelu_kernel(%arg0: i32, %arg1: memref<768x128xf32, #tpu.memory_space<vmem>>, %arg2: memref<128x64xf32, #tpu.memory_space<vmem>>, %arg3: memref<1x64xf32, #tpu.memory_space<vmem>>, %arg4: memref<768x64xf32, #tpu.memory_space<vmem>>) attributes {dimension_semantics = [#tpu.dimension_semantics<arbitrary>], iteration_bounds = array<i64: 1>, scalar_prefetch = 0 : i64, scratch_operands = 0 : i64, tpu.core_type = #tpu.core_type<tc>, window_params = [{pipeline_mode = #tpu.pipeline_mode<synchronous>, transform_indices = @transform_0, window_bounds = array<i64: 768, 128>}, {pipeline_mode = #tpu.pipeline_mode<synchronous>, transform_indices = @transform_1, window_bounds = array<i64: 128, 64>}, {pipeline_mode = #tpu.pipeline_mode<synchronous>, transform_indices = @transform_2, window_bounds = array<i64: 1, 64>}, {pipeline_mode = #tpu.pipeline_mode<synchronous>, transform_indices = @transform_3, window_bounds = array<i64: 768, 64>}]} {
    %c0 = arith.constant 0 : index
    %c0_0 = arith.constant 0 : index
    %0 = vector.load %arg1[%c0, %c0_0] : memref<768x128xf32, #tpu.memory_space<vmem>>, vector<768x128xf32>
    %c0_1 = arith.constant 0 : index
    %c0_2 = arith.constant 0 : index
    %1 = vector.load %arg2[%c0_1, %c0_2] : memref<128x64xf32, #tpu.memory_space<vmem>>, vector<128x64xf32>
    %cst = arith.constant dense<0.000000e+00> : vector<768x64xf32>
    %2 = tpu.matmul %0, %1, %cst {dimension_numbers = #tpu.dot_dimension_numbers<[1], [0], [0], [1], [0, 0, 1, 1], [], []>} : vector<768x128xf32>, vector<128x64xf32>, vector<768x64xf32> -> vector<768x64xf32>
    %c0_3 = arith.constant 0 : index
    %c0_4 = arith.constant 0 : index
    %3 = vector.load %arg3[%c0_3, %c0_4] : memref<1x64xf32, #tpu.memory_space<vmem>>, vector<1x64xf32>
    %4 = vector.broadcast %3 : vector<1x64xf32> to vector<768x64xf32>
    %5 = arith.addf %2, %4 : vector<768x64xf32>
    %cst_5 = arith.constant 0.000000e+00 : f32
    %6 = vector.broadcast %cst_5 : f32 to vector<768x64xf32>
    %7 = arith.cmpf oge, %5, %6 : vector<768x64xf32>
    %cst_6 = arith.constant 1.000000e-01 : f32
    %8 = vector.broadcast %cst_6 : f32 to vector<768x64xf32>
    %9 = arith.mulf %8, %5 : vector<768x64xf32>
    %10 = arith.select %7, %5, %9 : vector<768x64xi1>, vector<768x64xf32>
    %c0_7 = arith.constant 0 : index
    %c0_8 = arith.constant 0 : index
    %11 = vector.load %arg4[%c0_7, %c0_8] : memref<768x64xf32, #tpu.memory_space<vmem>>, vector<768x64xf32>
    tpu.vector_store %arg4[%c0_7, %c0_8], %10 {strides = array<i32>} : memref<768x64xf32, #tpu.memory_space<vmem>>, vector<768x64xf32>,
    return
  }
  func.func @transform_0(%arg0: i32) -> (i32, i32) {
    %c0_i32 = arith.constant 0 : i32
    %c0_i32_0 = arith.constant 0 : i32
    %c0_i32_1 = arith.constant 0 : i32
    return %c0_i32, %c0_i32_0 : i32, i32
  }
  func.func @transform_1(%arg0: i32) -> (i32, i32) {
    %c0_i32 = arith.constant 0 : i32
    %c0_i32_0 = arith.constant 0 : i32
    %c0_i32_1 = arith.constant 0 : i32
    return %c0_i32, %c0_i32_0 : i32, i32
  }
  func.func @transform_2(%arg0: i32) -> (i32, i32) {
    %c0_i32 = arith.constant 0 : i32
    %c0_i32_0 = arith.constant 0 : i32
    %c0_i32_1 = arith.constant 0 : i32
    return %c0_i32, %c0_i32_0 : i32, i32
  }
  func.func @transform_3(%arg0: i32) -> (i32, i32) {
    %c0_i32 = arith.constant 0 : i32
    %c0_i32_0 = arith.constant 0 : i32
    %c0_i32_1 = arith.constant 0 : i32
    return %c0_i32, %c0_i32_0 : i32, i32
  }
}

</mosaic_0001>

<bundles_post_ra>
// kernel: tpu_custom_call.1
= control target key start
LH: loop header
LB: loop body
LE: loop exit
PB: predicated region body
PF: predicated region fallthrough
CT: control target
= control target key end

     0   :  { %8 = vsyncpa [#allocation3], 0  ;;  %s1447_s12 = smov [#allocation2]   ;;  %s2010_s0 = inlined_call_operand.hbm [shape: f32[768,128], index: 0, kind: input, shape index: {}]   ;;  %s2011_s1 = inlined_call_operand.vmem [shape: f32[128,64], index: 1, kind: input, shape index: {}]   ;;  %s2012_s2 = inlined_call_operand.vmem [shape: f32[1,64], index: 2, kind: input, shape index: {}]   ;;  %s2013_s3 = inlined_call_operand.vmem [shape: f32[768,64], index: 3, kind: output, shape index: {}]  }
   0x1   :  { %s14_s13 = sshll.u32 %s1447_s12, 4  ;;  %s1423_s16 = scalar_lea.hbm %s2010_s0, 12288  ;;  %s15_s13 = int_to_ptr.vmem [resolvable:$true] %s14_s13 }
   0x2   :  { %p1424_p0 = scmp.ne.s32.totalorder %s2010_s0, %s1423_s16  ;;  %p1427_p1 = scmp.lt.u32.totalorder %s1423_s16, %s2010_s0 }
   0x4   :  { %p1429_p2 = pnand %p1427_p1, %p1424_p0 }
   0x6   :  { %1432 = shalt.err (!%p1429_p2)
}
   0x7   :  { %s1433_s21 = scalar_lea.vmem %s15_s13, 12288  ;;  %p1438_p4 = scmp.lt.s32.totalorder %s15_s13, %s15_s13 }
   0x8   :  { %p1434_p3 = scmp.ne.s32.totalorder %s15_s13, %s1433_s21  ;;  %p1439_p5 = scmp.lt.s32.totalorder %s1433_s21, %s1433_s21 }
   0xa   :  { %p1440_p6 = por %p1439_p5, %p1438_p4 }
   0xc   :  { %p1441_p7 = pnand %p1440_p6, %p1434_p3 }
   0xe   :  { %1444 = shalt.err (!%p1441_p7)
}
   0xf   :  { %s1448_s22 = smov 128   ;;  %s1449_s23 = smov 8  }
  0x10   :  { %20 = dma.hbm_to_vmem [thread:$0]  %s2010_s0, 12288, %s15_s13, [#allocation3], %s1448_s22, %s1448_s22, %s1449_s23  }
  0x11   :  { %1445 = dma.done.wait [#allocation3], 12288  }
  0x12   :  { %1446 = vsyncadd [#allocation3], 4294955008  ;;  %v124_v0 = vld [vmem:[%s2011_s1] sm:$0xff]  ;;  %v125_v1 = vld [vmem:[%s2011_s1 + $0x8] sm:$0xff]  ;;  %vm980_vm0 = vcmask 523264  }
  0x13   :  { %v126_v2 = vld [vmem:[%s2011_s1 + $0x10] sm:$0xff]  ;;  %v1371_v3 = vpack.c.bf16 %v125_v1, %v124_v0  ;;  %v127_v4 = vld [vmem:[%s2011_s1 + $0x18] sm:$0xff]  ;;  %v128_v6 = vld [vmem:[%s2011_s1 + $0x20] sm:$0xff] }
  0x14   :  { %v1375_v5 = vpack.c.bf16 %v127_v4, %v126_v2  ;;  %v129_v7 = vld [vmem:[%s2011_s1 + $0x28] sm:$0xff]  ;;  %v28_v9 = vld [vmem:[#allocation2] sm:$0xff]  ;;  %v130_v11 = vld [vmem:[%s2011_s1 + $0x30] sm:$0xff] }
  0x15   :  { %1372 = vmatprep.subr.bf16.mxu0 %v1371_v3  ;;  %1403 = vmatprep.subr.bf16.mxu1 %v1371_v3  ;;  %v1379_v8 = vpack.c.bf16 %v129_v7, %v128_v6  ;;  %v76_v10 = vld [vmem:[#allocation2 + $0x180] sm:$0xff]  ;;  %v131_v12 = vld [vmem:[%s2011_s1 + $0x38] sm:$0xff]  ;;  %v133_v15 = vld [vmem:[%s2011_s1 + $0x48] sm:$0xff] }
  0x16   :  { %1374 = vmatpush3.bf16.msra.mxu0 %v1371_v3  ;;  %1411 = vmatpush3.bf16.msra.mxu1 %v1371_v3  ;;  %v1383_v13 = vpack.c.bf16 %v131_v12, %v130_v11  ;;  %v132_v14 = vld [vmem:[%s2011_s1 + $0x40] sm:$0xff]  ;;  %v134_v17 = vld [vmem:[%s2011_s1 + $0x50] sm:$0xff]  ;;  %v135_v18 = vld [vmem:[%s2011_s1 + $0x58] sm:$0xff] }
  0x17   :  { %1376 = vmatprep.subr.bf16.mxu0 %v1375_v5  ;;  %1404 = vmatprep.subr.bf16.mxu1 %v1375_v5  ;;  %v1387_v16 = vpack.c.bf16 %v133_v15, %v132_v14  ;;  %v1391_v19 = vpack.c.bf16 %v135_v18, %v134_v17  ;;  %v136_v20 = vld [vmem:[%s2011_s1 + $0x60] sm:$0xff]  ;;  %v137_v21 = vld [vmem:[%s2011_s1 + $0x68] sm:$0xff]  ;;  %v138_v23 = vld [vmem:[%s2011_s1 + $0x70] sm:$0xff] }
  0x18   :  { %1227 = vmatprep.mubr.f32.mxu0 %v28_v9  ;;  %1299 = vmatprep.mubr.f32.mxu1 %v76_v10  ;;  %v1395_v22 = vpack.c.bf16 %v137_v21, %v136_v20  ;;  %v139_v24 = vld [vmem:[%s2011_s1 + $0x78] sm:$0xff]  ;;  %v29_v26 = vld [vmem:[#allocation2 + $0x8] sm:$0xff]  ;;  %v30_v28 = vld [vmem:[#allocation2 + $0x10] sm:$0xff] }
  0x19   :  { %v1399_v25 = vpack.c.bf16 %v139_v24, %v138_v23  ;;  %v77_v27 = vld [vmem:[#allocation2 + $0x188] sm:$0xff]  ;;  %v78_v29 = vld [vmem:[#allocation2 + $0x190] sm:$0xff]  ;;  %v31_v30 = vld [vmem:[#allocation2 + $0x18] sm:$0xff] }
  0x1a   :  { %1378 = vmatpush3.bf16.msra.mxu0 %v1375_v5  ;;  %1412 = vmatpush3.bf16.msra.mxu1 %v1375_v5  ;;  %v79_v31 = vld [vmem:[#allocation2 + $0x198] sm:$0xff]  ;;  %v32_v32 = vld [vmem:[#allocation2 + $0x20] sm:$0xff]  ;;  %v33_v34 = vld [vmem:[#allocation2 + $0x28] sm:$0xff] }
  0x1b   :  { %1380 = vmatprep.subr.bf16.mxu0 %v1379_v8  ;;  %1405 = vmatprep.subr.bf16.mxu1 %v1379_v8  ;;  %v80_v33 = vld [vmem:[#allocation2 + $0x1a0] sm:$0xff]  ;;  %v81_v35 = vld [vmem:[#allocation2 + $0x1a8] sm:$0xff]  ;;  %v34_v36 = vld [vmem:[#allocation2 + $0x30] sm:$0xff] }
  0x1c   :  { %v82_v37 = vld [vmem:[#allocation2 + $0x1b0] sm:$0xff]  ;;  %v35_v38 = vld [vmem:[#allocation2 + $0x38] sm:$0xff]  ;;  %v36_v40 = vld [vmem:[#allocation2 + $0x40] sm:$0xff] }
  0x1d   :  { %v83_v39 = vld [vmem:[#allocation2 + $0x1b8] sm:$0xff]  ;;  %v84_v41 = vld [vmem:[#allocation2 + $0x1c0] sm:$0xff]  ;;  %v37_v42 = vld [vmem:[#allocation2 + $0x48] sm:$0xff] }
  0x1e   :  { %1382 = vmatpush3.bf16.msra.mxu0 %v1379_v8  ;;  %1413 = vmatpush3.bf16.msra.mxu1 %v1379_v8  ;;  %v85_v43 = vld [vmem:[#allocation2 + $0x1c8] sm:$0xff]  ;;  %v38_v44 = vld [vmem:[#allocation2 + $0x50] sm:$0xff]  ;;  %v39_v46 = vld [vmem:[#allocation2 + $0x58] sm:$0xff] }
  0x1f   :  { %1384 = vmatprep.subr.bf16.mxu0 %v1383_v13  ;;  %1406 = vmatprep.subr.bf16.mxu1 %v1383_v13  ;;  %v86_v45 = vld [vmem:[#allocation2 + $0x1d0] sm:$0xff]  ;;  %v87_v47 = vld [vmem:[#allocation2 + $0x1d8] sm:$0xff]  ;;  %v40_v48 = vld [vmem:[#allocation2 + $0x60] sm:$0xff] }
  0x20   :  { %v88_v49 = vld [vmem:[#allocation2 + $0x1e0] sm:$0xff]  ;;  %v41_v50 = vld [vmem:[#allocation2 + $0x68] sm:$0xff]  ;;  %v42_v52 = vld [vmem:[#allocation2 + $0x70] sm:$0xff] }
  0x21   :  { %v89_v51 = vld [vmem:[#allocation2 + $0x1e8] sm:$0xff]  ;;  %v90_v53 = vld [vmem:[#allocation2 + $0x1f0] sm:$0xff]  ;;  %v43_v54 = vld [vmem:[#allocation2 + $0x78] sm:$0xff] }
  0x22   :  { %1386 = vmatpush3.bf16.msra.mxu0 %v1383_v13  ;;  %1414 = vmatpush3.bf16.msra.mxu1 %v1383_v13  ;;  %v91_v55 = vld [vmem:[#allocation2 + $0x1f8] sm:$0xff]  ;;  %v44_v56 = vld [vmem:[#allocation2 + $0x80] sm:$0xff]  ;;  %v45_v58 = vld [vmem:[#allocation2 + $0x88] sm:$0xff] }
  0x23   :  { %1388 = vmatprep.subr.bf16.mxu0 %v1387_v16  ;;  %1407 = vmatprep.subr.bf16.mxu1 %v1387_v16  ;;  %v92_v57 = vld [vmem:[#allocation2 + $0x200] sm:$0xff]  ;;  %v93_v59 = vld [vmem:[#allocation2 + $0x208] sm:$0xff]  ;;  %v46_v60 = vld [vmem:[#allocation2 + $0x90] sm:$0xff] }
  0x24   :  { %v94_v61 = vld [vmem:[#allocation2 + $0x210] sm:$0xff]  ;;  %v47_v62 = vld [vmem:[#allocation2 + $0x98] sm:$0xff]  ;;  %v48_v0 = vld [vmem:[#allocation2 + $0xa0] sm:$0xff] }
  0x25   :  { %v95_v63 = vld [vmem:[#allocation2 + $0x218] sm:$0xff]  ;;  %v96_v1 = vld [vmem:[#allocation2 + $0x220] sm:$0xff]  ;;  %v49_v2 = vld [vmem:[#allocation2 + $0xa8] sm:$0xff] }
  0x26   :  { %1390 = vmatpush3.bf16.msra.mxu0 %v1387_v16  ;;  %1415 = vmatpush3.bf16.msra.mxu1 %v1387_v16  ;;  %v97_v3 = vld [vmem:[#allocation2 + $0x228] sm:$0xff]  ;;  %v50_v4 = vld [vmem:[#allocation2 + $0xb0] sm:$0xff]  ;;  %v51_v6 = vld [vmem:[#allocation2 + $0xb8] sm:$0xff] }
  0x27   :  { %1392 = vmatprep.subr.bf16.mxu0 %v1391_v19  ;;  %1408 = vmatprep.subr.bf16.mxu1 %v1391_v19  ;;  %v98_v5 = vld [vmem:[#allocation2 + $0x230] sm:$0xff]  ;;  %v99_v7 = vld [vmem:[#allocation2 + $0x238] sm:$0xff]  ;;  %v52_v8 = vld [vmem:[#allocation2 + $0xc0] sm:$0xff] }
  0x28   :  { %v100_v9 = vld [vmem:[#allocation2 + $0x240] sm:$0xff]  ;;  %v53_v10 = vld [vmem:[#allocation2 + $0xc8] sm:$0xff]  ;;  %v54_v12 = vld [vmem:[#allocation2 + $0xd0] sm:$0xff] }
  0x29   :  { %v101_v11 = vld [vmem:[#allocation2 + $0x248] sm:$0xff]  ;;  %v102_v13 = vld [vmem:[#allocation2 + $0x250] sm:$0xff]  ;;  %v55_v14 = vld [vmem:[#allocation2 + $0xd8] sm:$0xff] }
  0x2a   :  { %1394 = vmatpush3.bf16.msra.mxu0 %v1391_v19  ;;  %1416 = vmatpush3.bf16.msra.mxu1 %v1391_v19  ;;  %v103_v15 = vld [vmem:[#allocation2 + $0x258] sm:$0xff]  ;;  %v56_v16 = vld [vmem:[#allocation2 + $0xe0] sm:$0xff]  ;;  %v57_v18 = vld [vmem:[#allocation2 + $0xe8] sm:$0xff] }
  0x2b   :  { %1396 = vmatprep.subr.bf16.mxu0 %v1395_v22  ;;  %1409 = vmatprep.subr.bf16.mxu1 %v1395_v22  ;;  %v104_v17 = vld [vmem:[#allocation2 + $0x260] sm:$0xff]  ;;  %v105_v19 = vld [vmem:[#allocation2 + $0x268] sm:$0xff]  ;;  %v58_v20 = vld [vmem:[#allocation2 + $0xf0] sm:$0xff] }
  0x2c   :  { %v106_v21 = vld [vmem:[#allocation2 + $0x270] sm:$0xff]  ;;  %v107_v23 = vld [vmem:[#allocation2 + $0x278] sm:$0xff]  ;;  %v60_v24 = vld [vmem:[#allocation2 + $0x100] sm:$0xff] }
  0x2e   :  { %1398 = vmatpush3.bf16.msra.mxu0 %v1395_v22  ;;  %1417 = vmatpush3.bf16.msra.mxu1 %v1395_v22  ;;  %v59_v22 = vld [vmem:[#allocation2 + $0xf8] sm:$0xff] }
  0x2f   :  { %1400 = vmatprep.subr.bf16.mxu0 %v1399_v25  ;;  %1410 = vmatprep.subr.bf16.mxu1 %v1399_v25 }
  0x32   :  { %1402 = vmatpush3.bf16.msra.mxu0 %v1399_v25  ;;  %1418 = vmatpush3.bf16.msra.mxu1 %v1399_v25  ;;  %v108_v25 = vld [vmem:[#allocation2 + $0x280] sm:$0xff] }
  0x35   :  { %1228 = vmatmul.mubr.f32.vlgmr.msra.gmra.mrb[0].mxu0 %v29_v26  ;;  %1300 = vmatmul.mubr.f32.vlgmr.msra.gmra.mrb[0].mxu1 %v77_v27  ;;  %v61_v26 = vld [vmem:[#allocation2 + $0x108] sm:$0xff] }
  0x36   :  { %1230 = vmatprep.mubr.f32.mxu0 %v30_v28  ;;  %1302 = vmatprep.mubr.f32.mxu1 %v78_v29  ;;  %v109_v27 = vld [vmem:[#allocation2 + $0x288] sm:$0xff]  ;;  %v62_v28 = vld [vmem:[#allocation2 + $0x110] sm:$0xff] }
  0x37   :  { %v110_v29 = vld [vmem:[#allocation2 + $0x290] sm:$0xff] }
  0x39   :  { %1231 = vmatmul.mubr.f32.gmra.mrb[2].mxu0 %v31_v30  ;;  %1303 = vmatmul.mubr.f32.gmra.mrb[2].mxu1 %v79_v31  ;;  %v63_v30 = vld [vmem:[#allocation2 + $0x118] sm:$0xff] }
  0x3a   :  { %1233 = vmatprep.mubr.f32.mxu0 %v32_v32  ;;  %1305 = vmatprep.mubr.f32.mxu1 %v80_v33  ;;  %v111_v31 = vld [vmem:[#allocation2 + $0x298] sm:$0xff]  ;;  %v64_v32 = vld [vmem:[#allocation2 + $0x120] sm:$0xff] }
  0x3b   :  { %v112_v33 = vld [vmem:[#allocation2 + $0x2a0] sm:$0xff] }
  0x3d   :  { %1234 = vmatmul.mubr.f32.gmra.mrb[4].mxu0 %v33_v34  ;;  %1306 = vmatmul.mubr.f32.gmra.mrb[4].mxu1 %v81_v35  ;;  %v65_v34 = vld [vmem:[#allocation2 + $0x128] sm:$0xff] }
  0x3e   :  { %1236 = vmatprep.mubr.f32.mxu0 %v34_v36  ;;  %1308 = vmatprep.mubr.f32.mxu1 %v82_v37  ;;  %v113_v35 = vld [vmem:[#allocation2 + $0x2a8] sm:$0xff]  ;;  %v66_v36 = vld [vmem:[#allocation2 + $0x130] sm:$0xff] }
  0x3f   :  { %v114_v37 = vld [vmem:[#allocation2 + $0x2b0] sm:$0xff] }
  0x41   :  { %1237 = vmatmul.mubr.f32.gmra.mrb[6].mxu0 %v35_v38  ;;  %1309 = vmatmul.mubr.f32.gmra.mrb[6].mxu1 %v83_v39  ;;  %v67_v38 = vld [vmem:[#allocation2 + $0x138] sm:$0xff] }
  0x42   :  { %1239 = vmatprep.mubr.f32.mxu0 %v36_v40  ;;  %1311 = vmatprep.mubr.f32.mxu1 %v84_v41  ;;  %v115_v39 = vld [vmem:[#allocation2 + $0x2b8] sm:$0xff]  ;;  %v68_v40 = vld [vmem:[#allocation2 + $0x140] sm:$0xff] }
  0x43   :  { %v116_v41 = vld [vmem:[#allocation2 + $0x2c0] sm:$0xff] }
  0x45   :  { %1240 = vmatmul.mubr.f32.gmra.mrb[8].mxu0 %v37_v42  ;;  %1312 = vmatmul.mubr.f32.gmra.mrb[8].mxu1 %v85_v43  ;;  %v69_v42 = vld [vmem:[#allocation2 + $0x148] sm:$0xff] }
  0x46   :  { %1242 = vmatprep.mubr.f32.mxu0 %v38_v44  ;;  %1314 = vmatprep.mubr.f32.mxu1 %v86_v45  ;;  %v117_v43 = vld [vmem:[#allocation2 + $0x2c8] sm:$0xff]  ;;  %v70_v44 = vld [vmem:[#allocation2 + $0x150] sm:$0xff] }
  0x47   :  { %v118_v45 = vld [vmem:[#allocation2 + $0x2d0] sm:$0xff] }
  0x49   :  { %1243 = vmatmul.mubr.f32.gmra.mrb[10].mxu0 %v39_v46  ;;  %1315 = vmatmul.mubr.f32.gmra.mrb[10].mxu1 %v87_v47  ;;  %v71_v46 = vld [vmem:[#allocation2 + $0x158] sm:$0xff] }
  0x4a   :  { %1245 = vmatprep.mubr.f32.mxu0 %v40_v48  ;;  %1317 = vmatprep.mubr.f32.mxu1 %v88_v49  ;;  %v119_v47 = vld [vmem:[#allocation2 + $0x2d8] sm:$0xff]  ;;  %v72_v48 = vld [vmem:[#allocation2 + $0x160] sm:$0xff] }
  0x4b   :  { %v120_v49 = vld [vmem:[#allocation2 + $0x2e0] sm:$0xff] }
  0x4d   :  { %1246 = vmatmul.mubr.f32.gmra.mrb[12].mxu0 %v41_v50  ;;  %1318 = vmatmul.mubr.f32.gmra.mrb[12].mxu1 %v89_v51  ;;  %v73_v50 = vld [vmem:[#allocation2 + $0x168] sm:$0xff] }
  0x4e   :  { %1248 = vmatprep.mubr.f32.mxu0 %v42_v52  ;;  %1320 = vmatprep.mubr.f32.mxu1 %v90_v53  ;;  %v121_v51 = vld [vmem:[#allocation2 + $0x2e8] sm:$0xff]  ;;  %v74_v52 = vld [vmem:[#allocation2 + $0x170] sm:$0xff] }
  0x4f   :  { %v122_v53 = vld [vmem:[#allocation2 + $0x2f0] sm:$0xff] }
  0x51   :  { %1249 = vmatmul.mubr.f32.gmra.mrb[14].mxu0 %v43_v54  ;;  %1321 = vmatmul.mubr.f32.gmra.mrb[14].mxu1 %v91_v55  ;;  %v75_v54 = vld [vmem:[#allocation2 + $0x178] sm:$0xff] }
  0x52   :  { %1251 = vmatprep.mubr.f32.mxu0 %v44_v56  ;;  %1323 = vmatprep.mubr.f32.mxu1 %v92_v57  ;;  %v123_v55 = vld [vmem:[#allocation2 + $0x2f8] sm:$0xff]  ;;  %v1533_v56 = vld [vmem:[%s2012_s2] ss:$0 sm:$0xff] }
  0x55   :  { %1252 = vmatmul.mubr.f32.gmra.mrb[16].mxu0 %v45_v58  ;;  %1324 = vmatmul.mubr.f32.gmra.mrb[16].mxu1 %v93_v59 }
  0x56   :  { %1254 = vmatprep.mubr.f32.mxu0 %v46_v60  ;;  %1326 = vmatprep.mubr.f32.mxu1 %v94_v61 }
  0x59   :  { %1255 = vmatmul.mubr.f32.gmra.mrb[18].mxu0 %v47_v62  ;;  %1327 = vmatmul.mubr.f32.gmra.mrb[18].mxu1 %v95_v63 }
  0x5a   :  { %1257 = vmatprep.mubr.f32.mxu0 %v48_v0  ;;  %1329 = vmatprep.mubr.f32.mxu1 %v96_v1 }
  0x5d   :  { %1258 = vmatmul.mubr.f32.gmra.mrb[20].mxu0 %v49_v2  ;;  %1330 = vmatmul.mubr.f32.gmra.mrb[20].mxu1 %v97_v3 }
  0x5e   :  { %1260 = vmatprep.mubr.f32.mxu0 %v50_v4  ;;  %1332 = vmatprep.mubr.f32.mxu1 %v98_v5 }
  0x61   :  { %1261 = vmatmul.mubr.f32.gmra.mrb[22].mxu0 %v51_v6  ;;  %1333 = vmatmul.mubr.f32.gmra.mrb[22].mxu1 %v99_v7 }
  0x62   :  { %1263 = vmatprep.mubr.f32.mxu0 %v52_v8  ;;  %1335 = vmatprep.mubr.f32.mxu1 %v100_v9 }
  0x65   :  { %1264 = vmatmul.mubr.f32.gmra.mrb[24].mxu0 %v53_v10  ;;  %1336 = vmatmul.mubr.f32.gmra.mrb[24].mxu1 %v101_v11 }
  0x66   :  { %1266 = vmatprep.mubr.f32.mxu0 %v54_v12  ;;  %1338 = vmatprep.mubr.f32.mxu1 %v102_v13 }
  0x69   :  { %1267 = vmatmul.mubr.f32.gmra.mrb[26].mxu0 %v55_v14  ;;  %1339 = vmatmul.mubr.f32.gmra.mrb[26].mxu1 %v103_v15 }
  0x6a   :  { %1269 = vmatprep.mubr.f32.mxu0 %v56_v16  ;;  %1341 = vmatprep.mubr.f32.mxu1 %v104_v17 }
  0x6d   :  { %1270 = vmatmul.mubr.f32.gmra.mrb[28].mxu0 %v57_v18  ;;  %1342 = vmatmul.mubr.f32.gmra.mrb[28].mxu1 %v105_v19 }
  0x6e   :  { %1272 = vmatprep.mubr.f32.mxu0 %v58_v20  ;;  %1344 = vmatprep.mubr.f32.mxu1 %v106_v21 }
  0x71   :  { %1273 = vmatmul.mubr.f32.gmra.mrb[30].mxu0 %v59_v22  ;;  %1345 = vmatmul.mubr.f32.gmra.mrb[30].mxu1 %v107_v23 }
  0x72   :  { %1275 = vmatprep.mubr.f32.mxu0 %v60_v24  ;;  %1347 = vmatprep.mubr.f32.mxu1 %v108_v25 }
  0x75   :  { %1276 = vmatmul.mubr.f32.gmra.mrb[32].mxu0 %v61_v26  ;;  %1348 = vmatmul.mubr.f32.gmra.mrb[32].mxu1 %v109_v27 }
  0x76   :  { %1278 = vmatprep.mubr.f32.mxu0 %v62_v28  ;;  %1350 = vmatprep.mubr.f32.mxu1 %v110_v29 }
  0x79   :  { %1279 = vmatmul.mubr.f32.gmra.mrb[34].mxu0 %v63_v30  ;;  %1351 = vmatmul.mubr.f32.gmra.mrb[34].mxu1 %v111_v31 }
  0x7a   :  { %1281 = vmatprep.mubr.f32.mxu0 %v64_v32  ;;  %1353 = vmatprep.mubr.f32.mxu1 %v112_v33 }
  0x7d   :  { %1282 = vmatmul.mubr.f32.gmra.mrb[36].mxu0 %v65_v34  ;;  %1354 = vmatmul.mubr.f32.gmra.mrb[36].mxu1 %v113_v35 }
  0x7e   :  { %1284 = vmatprep.mubr.f32.mxu0 %v66_v36  ;;  %1356 = vmatprep.mubr.f32.mxu1 %v114_v37 }
  0x81   :  { %1285 = vmatmul.mubr.f32.gmra.mrb[38].mxu0 %v67_v38  ;;  %1357 = vmatmul.mubr.f32.gmra.mrb[38].mxu1 %v115_v39 }
  0x82   :  { %1287 = vmatprep.mubr.f32.mxu0 %v68_v40  ;;  %1359 = vmatprep.mubr.f32.mxu1 %v116_v41 }
  0x85   :  { %1288 = vmatmul.mubr.f32.gmra.mrb[40].mxu0 %v69_v42  ;;  %1360 = vmatmul.mubr.f32.gmra.mrb[40].mxu1 %v117_v43 }
  0x86   :  { %1290 = vmatprep.mubr.f32.mxu0 %v70_v44  ;;  %1362 = vmatprep.mubr.f32.mxu1 %v118_v45 }
  0x89   :  { %1291 = vmatmul.mubr.f32.gmra.mrb[42].mxu0 %v71_v46  ;;  %1363 = vmatmul.mubr.f32.gmra.mrb[42].mxu1 %v119_v47 }
  0x8a   :  { %1293 = vmatprep.mubr.f32.mxu0 %v72_v48  ;;  %1365 = vmatprep.mubr.f32.mxu1 %v120_v49 }
  0x8d   :  { %1294 = vmatmul.mubr.f32.gmra.mrb[44].mxu0 %v73_v50  ;;  %1366 = vmatmul.mubr.f32.gmra.mrb[44].mxu1 %v121_v51 }
  0x8e   :  { %1296 = vmatprep.mubr.f32.mxu0 %v74_v52  ;;  %1368 = vmatprep.mubr.f32.mxu1 %v122_v53 }
  0x91   :  { %1297 = vmatmul.mubr.f32.gmra.mrb[46].mxu0 %v75_v54  ;;  %1369 = vmatmul.mubr.f32.gmra.mrb[46].mxu1 %v123_v55 }
 0x108   :  { %v1229_v57 = vpop.f32.mrb[0].mxu0  ;;  %v1301_v58 = vpop.f32.mrb[0].mxu1 }
 0x109   :  { %v219_v59 = vadd.f32 %v1229_v57, %v1533_v56  ;;  %v459_v60 = vadd.f32 %v1301_v58, %v1533_v56  ;;  %v213_v61 = vpop.f32.mrb[1].mxu0  ;;  %v453_v62 = vpop.f32.mrb[1].mxu1 }
 0x10a   :  { %v214_v63 = vadd.f32 %v1533_v56, %v213_v61  ;;  %v454_v0 = vadd.f32 %v1533_v56, %v453_v62 }
 0x10b   :  { %vm693_vm1 = vcmp.ge.f32.partialorder %v219_v59, 0.0  ;;  %v789_v1 = vmul.f32 0.1, %v219_v59  ;;  %vm741_vm2 = vcmp.ge.f32.partialorder %v459_v60, 0.0  ;;  %v837_v2 = vmul.f32 0.1, %v459_v60 }
 0x10c   :  { %vm692_vm3 = vcmp.ge.f32.partialorder %v214_v63, 0.0  ;;  %v788_v3 = vmul.f32 0.1, %v214_v63  ;;  %vm740_vm4 = vcmp.ge.f32.partialorder %v454_v0, 0.0  ;;  %v836_v4 = vmul.f32 0.1, %v454_v0 }
 0x10d   :  { %v885_v5 = vsel %vm693_vm1, %v219_v59, %v789_v1  ;;  %v933_v6 = vsel %vm741_vm2, %v459_v60, %v837_v2  ;;  %v1232_v7 = vpop.f32.mrb[2].mxu0  ;;  %v1304_v8 = vpop.f32.mrb[2].mxu1 }
 0x10e   :  { %982 = vst.msk [vmem:[%s2013_s3 + $0x8] sm:$0xff] %vm980_vm0, %v885_v5  ;;  %1030 = vst.msk [vmem:[%s2013_s3 + $0x188] sm:$0xff] %vm980_vm0, %v933_v6  ;;  %v884_v9 = vsel %vm692_vm3, %v214_v63, %v788_v3  ;;  %v932_v10 = vsel %vm740_vm4, %v454_v0, %v836_v4  ;;  %v229_v11 = vadd.f32 %v1232_v7, %v1533_v56  ;;  %v223_v13 = vpop.f32.mrb[3].mxu0  ;;  %v463_v14 = vpop.f32.mrb[3].mxu1 }
 0x10f   :  { %v469_v12 = vadd.f32 %v1304_v8, %v1533_v56  ;;  %981 = vst.msk [vmem:[%s2013_s3] sm:$0xff] %vm980_vm0, %v884_v9  ;;  %1029 = vst.msk [vmem:[%s2013_s3 + $0x180] sm:$0xff] %vm980_vm0, %v932_v10  ;;  %v224_v15 = vadd.f32 %v1533_v56, %v223_v13  ;;  %v464_v16 = vadd.f32 %v1533_v56, %v463_v14 }
 0x110   :  { %vm695_vm5 = vcmp.ge.f32.partialorder %v229_v11, 0.0  ;;  %v791_v17 = vmul.f32 0.1, %v229_v11  ;;  %v1235_v23 = vpop.f32.mrb[4].mxu0  ;;  %v1307_v24 = vpop.f32.mrb[4].mxu1 }
 0x111   :  { %vm743_vm6 = vcmp.ge.f32.partialorder %v469_v12, 0.0  ;;  %v839_v18 = vmul.f32 0.1, %v469_v12  ;;  %vm694_vm7 = vcmp.ge.f32.partialorder %v224_v15, 0.0  ;;  %v790_v19 = vmul.f32 0.1, %v224_v15 }
 0x112   :  { %vm742_vm8 = vcmp.ge.f32.partialorder %v464_v16, 0.0  ;;  %v838_v20 = vmul.f32 0.1, %v464_v16  ;;  %v887_v21 = vsel %vm695_vm5, %v229_v11, %v791_v17  ;;  %v239_v27 = vadd.f32 %v1235_v23, %v1533_v56  ;;  %v233_v29 = vpop.f32.mrb[5].mxu0  ;;  %v473_v30 = vpop.f32.mrb[5].mxu1 }
 0x113   :  { %v935_v22 = vsel %vm743_vm6, %v469_v12, %v839_v18  ;;  %984 = vst.msk [vmem:[%s2013_s3 + $0x18] sm:$0xff] %vm980_vm0, %v887_v21  ;;  %v886_v25 = vsel %vm694_vm7, %v224_v15, %v790_v19  ;;  %v479_v28 = vadd.f32 %v1307_v24, %v1533_v56  ;;  %v234_v31 = vadd.f32 %v1533_v56, %v233_v29 }
 0x114   :  { %1032 = vst.msk [vmem:[%s2013_s3 + $0x198] sm:$0xff] %vm980_vm0, %v935_v22  ;;  %v934_v26 = vsel %vm742_vm8, %v464_v16, %v838_v20  ;;  %983 = vst.msk [vmem:[%s2013_s3 + $0x10] sm:$0xff] %vm980_vm0, %v886_v25  ;;  %v474_v32 = vadd.f32 %v1533_v56, %v473_v30  ;;  %v1238_v33 = vpop.f32.mrb[6].mxu0  ;;  %v1310_v34 = vpop.f32.mrb[6].mxu1  ;;  %vm697_vm9 = vcmp.ge.f32.partialorder %v239_v27, 0.0 }
 0x115   :  { %1031 = vst.msk [vmem:[%s2013_s3 + $0x190] sm:$0xff] %vm980_vm0, %v934_v26  ;;  %v793_v35 = vmul.f32 0.1, %v239_v27  ;;  %vm745_vm10 = vcmp.ge.f32.partialorder %v479_v28, 0.0  ;;  %v841_v36 = vmul.f32 0.1, %v479_v28  ;;  %v249_v41 = vadd.f32 %v1238_v33, %v1533_v56 }
 0x116   :  { %vm696_vm11 = vcmp.ge.f32.partialorder %v234_v31, 0.0  ;;  %v792_v37 = vmul.f32 0.1, %v234_v31  ;;  %vm744_vm12 = vcmp.ge.f32.partialorder %v474_v32, 0.0  ;;  %v840_v38 = vmul.f32 0.1, %v474_v32 }
 0x117   :  { %v889_v39 = vsel %vm697_vm9, %v239_v27, %v793_v35  ;;  %v937_v40 = vsel %vm745_vm10, %v479_v28, %v841_v36  ;;  %v489_v42 = vadd.f32 %v1310_v34, %v1533_v56  ;;  %v243_v43 = vpop.f32.mrb[7].mxu0  ;;  %v483_v44 = vpop.f32.mrb[7].mxu1  ;;  %vm699_vm13 = vcmp.ge.f32.partialorder %v249_v41, 0.0 }
 0x118   :  { %986 = vst.msk [vmem:[%s2013_s3 + $0x28] sm:$0xff] %vm980_vm0, %v889_v39  ;;  %1034 = vst.msk [vmem:[%s2013_s3 + $0x1a8] sm:$0xff] %vm980_vm0, %v937_v40  ;;  %v888_v45 = vsel %vm696_vm11, %v234_v31, %v792_v37  ;;  %v936_v46 = vsel %vm744_vm12, %v474_v32, %v840_v38  ;;  %v244_v47 = vadd.f32 %v1533_v56, %v243_v43  ;;  %v1241_v49 = vpop.f32.mrb[8].mxu0  ;;  %v1313_v50 = vpop.f32.mrb[8].mxu1  ;;  %v795_v51 = vmul.f32 0.1, %v249_v41 }
 0x119   :  { %v484_v48 = vadd.f32 %v1533_v56, %v483_v44  ;;  %985 = vst.msk [vmem:[%s2013_s3 + $0x20] sm:$0xff] %vm980_vm0, %v888_v45  ;;  %1033 = vst.msk [vmem:[%s2013_s3 + $0x1a0] sm:$0xff] %vm980_vm0, %v936_v46  ;;  %vm747_vm14 = vcmp.ge.f32.partialorder %v489_v42, 0.0  ;;  %v843_v52 = vmul.f32 0.1, %v489_v42  ;;  %v259_v58 = vadd.f32 %v1241_v49, %v1533_v56  ;;  %v253_v60 = vpop.f32.mrb[9].mxu0 }
 0x11a   :  { %vm698_vm15 = vcmp.ge.f32.partialorder %v244_v47, 0.0  ;;  %v794_v53 = vmul.f32 0.1, %v244_v47  ;;  %v891_v55 = vsel %vm699_vm13, %v249_v41, %v795_v51  ;;  %v499_v59 = vadd.f32 %v1313_v50, %v1533_v56  ;;  %v493_v61 = vpop.f32.mrb[9].mxu1 }
 0x11b   :  { %vm746_vm1 = vcmp.ge.f32.partialorder %v484_v48, 0.0  ;;  %v842_v54 = vmul.f32 0.1, %v484_v48  ;;  %v939_v57 = vsel %vm747_vm14, %v489_v42, %v843_v52  ;;  %988 = vst.msk [vmem:[%s2013_s3 + $0x38] sm:$0xff] %vm980_vm0, %v891_v55  ;;  %v254_v0 = vadd.f32 %v1533_v56, %v253_v60 }
 0x11c   :  { %1036 = vst.msk [vmem:[%s2013_s3 + $0x1b8] sm:$0xff] %vm980_vm0, %v939_v57  ;;  %v890_v62 = vsel %vm698_vm15, %v244_v47, %v794_v53  ;;  %v494_v1 = vadd.f32 %v1533_v56, %v493_v61  ;;  %v1244_v2 = vpop.f32.mrb[10].mxu0  ;;  %v1316_v3 = vpop.f32.mrb[10].mxu1  ;;  %vm701_vm2 = vcmp.ge.f32.partialorder %v259_v58, 0.0  ;;  %v797_v4 = vmul.f32 0.1, %v259_v58 }
 0x11d   :  { %v938_v63 = vsel %vm746_vm1, %v484_v48, %v842_v54  ;;  %987 = vst.msk [vmem:[%s2013_s3 + $0x30] sm:$0xff] %vm980_vm0, %v890_v62  ;;  %vm749_vm3 = vcmp.ge.f32.partialorder %v499_v59, 0.0  ;;  %v845_v5 = vmul.f32 0.1, %v499_v59  ;;  %vm700_vm4 = vcmp.ge.f32.partialorder %v254_v0, 0.0  ;;  %v263_v12 = vpop.f32.mrb[11].mxu0 }
 0x11e   :  { %1035 = vst.msk [vmem:[%s2013_s3 + $0x1b0] sm:$0xff] %vm980_vm0, %v938_v63  ;;  %v796_v6 = vmul.f32 0.1, %v254_v0  ;;  %vm748_vm5 = vcmp.ge.f32.partialorder %v494_v1, 0.0  ;;  %v844_v7 = vmul.f32 0.1, %v494_v1  ;;  %v893_v8 = vsel %vm701_vm2, %v259_v58, %v797_v4 }
 0x11f   :  { %v941_v9 = vsel %vm749_vm3, %v499_v59, %v845_v5  ;;  %v269_v10 = vadd.f32 %v1244_v2, %v1533_v56  ;;  %v509_v11 = vadd.f32 %v1316_v3, %v1533_v56  ;;  %v503_v13 = vpop.f32.mrb[11].mxu1  ;;  %990 = vst.msk [vmem:[%s2013_s3 + $0x48] sm:$0xff] %vm980_vm0, %v893_v8  ;;  %v264_v16 = vadd.f32 %v1533_v56, %v263_v12 }
 0x120   :  { %1038 = vst.msk [vmem:[%s2013_s3 + $0x1c8] sm:$0xff] %vm980_vm0, %v941_v9  ;;  %v892_v14 = vsel %vm700_vm4, %v254_v0, %v796_v6  ;;  %v940_v15 = vsel %vm748_vm5, %v494_v1, %v844_v7  ;;  %v504_v17 = vadd.f32 %v1533_v56, %v503_v13  ;;  %v1247_v18 = vpop.f32.mrb[12].mxu0  ;;  %v1319_v19 = vpop.f32.mrb[12].mxu1 }
 0x121   :  { %989 = vst.msk [vmem:[%s2013_s3 + $0x40] sm:$0xff] %vm980_vm0, %v892_v14  ;;  %1037 = vst.msk [vmem:[%s2013_s3 + $0x1c0] sm:$0xff] %vm980_vm0, %v940_v15  ;;  %vm703_vm6 = vcmp.ge.f32.partialorder %v269_v10, 0.0  ;;  %v799_v20 = vmul.f32 0.1, %v269_v10  ;;  %vm751_vm7 = vcmp.ge.f32.partialorder %v509_v11, 0.0  ;;  %v279_v26 = vadd.f32 %v1247_v18, %v1533_v56 }
 0x122   :  { %v847_v21 = vmul.f32 0.1, %v509_v11  ;;  %vm702_vm8 = vcmp.ge.f32.partialorder %v264_v16, 0.0  ;;  %v798_v22 = vmul.f32 0.1, %v264_v16  ;;  %vm750_vm9 = vcmp.ge.f32.partialorder %v504_v17, 0.0 }
 0x123   :  { %v846_v23 = vmul.f32 0.1, %v504_v17  ;;  %v895_v24 = vsel %vm703_vm6, %v269_v10, %v799_v20  ;;  %v519_v27 = vadd.f32 %v1319_v19, %v1533_v56  ;;  %v273_v28 = vpop.f32.mrb[13].mxu0  ;;  %v513_v29 = vpop.f32.mrb[13].mxu1  ;;  %vm705_vm10 = vcmp.ge.f32.partialorder %v279_v26, 0.0 }
 0x124   :  { %v943_v25 = vsel %vm751_vm7, %v509_v11, %v847_v21  ;;  %992 = vst.msk [vmem:[%s2013_s3 + $0x58] sm:$0xff] %vm980_vm0, %v895_v24  ;;  %v894_v30 = vsel %vm702_vm8, %v264_v16, %v798_v22  ;;  %v274_v32 = vadd.f32 %v1533_v56, %v273_v28  ;;  %v514_v33 = vadd.f32 %v1533_v56, %v513_v29  ;;  %v1250_v34 = vpop.f32.mrb[14].mxu0  ;;  %v1322_v35 = vpop.f32.mrb[14].mxu1 }
 0x125   :  { %1040 = vst.msk [vmem:[%s2013_s3 + $0x1d8] sm:$0xff] %vm980_vm0, %v943_v25  ;;  %v942_v31 = vsel %vm750_vm9, %v504_v17, %v846_v23  ;;  %991 = vst.msk [vmem:[%s2013_s3 + $0x50] sm:$0xff] %vm980_vm0, %v894_v30  ;;  %v801_v36 = vmul.f32 0.1, %v279_v26  ;;  %vm753_vm11 = vcmp.ge.f32.partialorder %v519_v27, 0.0  ;;  %v289_v42 = vadd.f32 %v1250_v34, %v1533_v56  ;;  %v283_v44 = vpop.f32.mrb[15].mxu0 }
 0x126   :  { %1039 = vst.msk [vmem:[%s2013_s3 + $0x1d0] sm:$0xff] %vm980_vm0, %v942_v31  ;;  %v849_v37 = vmul.f32 0.1, %v519_v27  ;;  %vm704_vm12 = vcmp.ge.f32.partialorder %v274_v32, 0.0  ;;  %v800_v38 = vmul.f32 0.1, %v274_v32  ;;  %v529_v43 = vadd.f32 %v1322_v35, %v1533_v56 }
 0x127   :  { %vm752_vm13 = vcmp.ge.f32.partialorder %v514_v33, 0.0  ;;  %v848_v39 = vmul.f32 0.1, %v514_v33  ;;  %v897_v40 = vsel %vm705_vm10, %v279_v26, %v801_v36  ;;  %v523_v45 = vpop.f32.mrb[15].mxu1  ;;  %v284_v48 = vadd.f32 %v1533_v56, %v283_v44 }
 0x128   :  { %v945_v41 = vsel %vm753_vm11, %v519_v27, %v849_v37  ;;  %994 = vst.msk [vmem:[%s2013_s3 + $0x68] sm:$0xff] %vm980_vm0, %v897_v40  ;;  %v896_v46 = vsel %vm704_vm12, %v274_v32, %v800_v38  ;;  %v524_v49 = vadd.f32 %v1533_v56, %v523_v45  ;;  %v1253_v50 = vpop.f32.mrb[16].mxu0  ;;  %v1325_v51 = vpop.f32.mrb[16].mxu1  ;;  %vm707_vm14 = vcmp.ge.f32.partialorder %v289_v42, 0.0 }
 0x129   :  { %1042 = vst.msk [vmem:[%s2013_s3 + $0x1e8] sm:$0xff] %vm980_vm0, %v945_v41  ;;  %v944_v47 = vsel %vm752_vm13, %v514_v33, %v848_v39  ;;  %993 = vst.msk [vmem:[%s2013_s3 + $0x60] sm:$0xff] %vm980_vm0, %v896_v46  ;;  %v803_v52 = vmul.f32 0.1, %v289_v42  ;;  %vm755_vm15 = vcmp.ge.f32.partialorder %v529_v43, 0.0  ;;  %vm706_vm1 = vcmp.ge.f32.partialorder %v284_v48, 0.0 }
 0x12a   :  { %1041 = vst.msk [vmem:[%s2013_s3 + $0x1e0] sm:$0xff] %vm980_vm0, %v944_v47  ;;  %v851_v53 = vmul.f32 0.1, %v529_v43  ;;  %v802_v54 = vmul.f32 0.1, %v284_v48  ;;  %vm754_vm2 = vcmp.ge.f32.partialorder %v524_v49, 0.0  ;;  %v299_v59 = vadd.f32 %v1253_v50, %v1533_v56 }
 0x12b   :  { %v850_v55 = vmul.f32 0.1, %v524_v49  ;;  %v899_v57 = vsel %vm707_vm14, %v289_v42, %v803_v52  ;;  %v539_v60 = vadd.f32 %v1325_v51, %v1533_v56  ;;  %v293_v61 = vpop.f32.mrb[17].mxu0  ;;  %v533_v62 = vpop.f32.mrb[17].mxu1 }
 0x12c   :  { %v947_v58 = vsel %vm755_vm15, %v529_v43, %v851_v53  ;;  %996 = vst.msk [vmem:[%s2013_s3 + $0x78] sm:$0xff] %vm980_vm0, %v899_v57  ;;  %v898_v63 = vsel %vm706_vm1, %v284_v48, %v802_v54  ;;  %v294_v1 = vadd.f32 %v1533_v56, %v293_v61  ;;  %v534_v2 = vadd.f32 %v1533_v56, %v533_v62  ;;  %v1256_v3 = vpop.f32.mrb[18].mxu0  ;;  %v1328_v4 = vpop.f32.mrb[18].mxu1 }
 0x12d   :  { %1044 = vst.msk [vmem:[%s2013_s3 + $0x1f8] sm:$0xff] %vm980_vm0, %v947_v58  ;;  %v946_v0 = vsel %vm754_vm2, %v524_v49, %v850_v55  ;;  %995 = vst.msk [vmem:[%s2013_s3 + $0x70] sm:$0xff] %vm980_vm0, %v898_v63  ;;  %vm709_vm3 = vcmp.ge.f32.partialorder %v299_v59, 0.0  ;;  %v805_v5 = vmul.f32 0.1, %v299_v59  ;;  %vm757_vm4 = vcmp.ge.f32.partialorder %v539_v60, 0.0 }
 0x12e   :  { %1043 = vst.msk [vmem:[%s2013_s3 + $0x1f0] sm:$0xff] %vm980_vm0, %v946_v0  ;;  %v853_v6 = vmul.f32 0.1, %v539_v60  ;;  %vm708_vm5 = vcmp.ge.f32.partialorder %v294_v1, 0.0  ;;  %v804_v7 = vmul.f32 0.1, %v294_v1  ;;  %v309_v11 = vadd.f32 %v1256_v3, %v1533_v56 }
 0x12f   :  { %vm756_vm6 = vcmp.ge.f32.partialorder %v534_v2, 0.0  ;;  %v852_v8 = vmul.f32 0.1, %v534_v2  ;;  %v901_v9 = vsel %vm709_vm3, %v299_v59, %v805_v5  ;;  %v549_v12 = vadd.f32 %v1328_v4, %v1533_v56  ;;  %v303_v13 = vpop.f32.mrb[19].mxu0  ;;  %v543_v14 = vpop.f32.mrb[19].mxu1 }
 0x130   :  { %v949_v10 = vsel %vm757_vm4, %v539_v60, %v853_v6  ;;  %998 = vst.msk [vmem:[%s2013_s3 + $0x88] sm:$0xff] %vm980_vm0, %v901_v9  ;;  %v900_v15 = vsel %vm708_vm5, %v294_v1, %v804_v7  ;;  %v304_v17 = vadd.f32 %v1533_v56, %v303_v13  ;;  %v544_v18 = vadd.f32 %v1533_v56, %v543_v14  ;;  %v1259_v19 = vpop.f32.mrb[20].mxu0  ;;  %v1331_v20 = vpop.f32.mrb[20].mxu1 }
 0x131   :  { %1046 = vst.msk [vmem:[%s2013_s3 + $0x208] sm:$0xff] %vm980_vm0, %v949_v10  ;;  %v948_v16 = vsel %vm756_vm6, %v534_v2, %v852_v8  ;;  %997 = vst.msk [vmem:[%s2013_s3 + $0x80] sm:$0xff] %vm980_vm0, %v900_v15  ;;  %vm711_vm7 = vcmp.ge.f32.partialorder %v309_v11, 0.0  ;;  %v807_v21 = vmul.f32 0.1, %v309_v11  ;;  %vm759_vm8 = vcmp.ge.f32.partialorder %v549_v12, 0.0 }
 0x132   :  { %1045 = vst.msk [vmem:[%s2013_s3 + $0x200] sm:$0xff] %vm980_vm0, %v948_v16  ;;  %v855_v22 = vmul.f32 0.1, %v549_v12  ;;  %vm710_vm9 = vcmp.ge.f32.partialorder %v304_v17, 0.0  ;;  %v806_v23 = vmul.f32 0.1, %v304_v17  ;;  %v319_v27 = vadd.f32 %v1259_v19, %v1533_v56 }
 0x133   :  { %vm758_vm10 = vcmp.ge.f32.partialorder %v544_v18, 0.0  ;;  %v854_v24 = vmul.f32 0.1, %v544_v18  ;;  %v903_v25 = vsel %vm711_vm7, %v309_v11, %v807_v21  ;;  %v559_v28 = vadd.f32 %v1331_v20, %v1533_v56  ;;  %v313_v29 = vpop.f32.mrb[21].mxu0  ;;  %v553_v30 = vpop.f32.mrb[21].mxu1 }
 0x134   :  { %v951_v26 = vsel %vm759_vm8, %v549_v12, %v855_v22  ;;  %1000 = vst.msk [vmem:[%s2013_s3 + $0x98] sm:$0xff] %vm980_vm0, %v903_v25  ;;  %v902_v31 = vsel %vm710_vm9, %v304_v17, %v806_v23  ;;  %v314_v33 = vadd.f32 %v1533_v56, %v313_v29  ;;  %v554_v34 = vadd.f32 %v1533_v56, %v553_v30  ;;  %v1262_v35 = vpop.f32.mrb[22].mxu0  ;;  %v1334_v36 = vpop.f32.mrb[22].mxu1 }
 0x135   :  { %1048 = vst.msk [vmem:[%s2013_s3 + $0x218] sm:$0xff] %vm980_vm0, %v951_v26  ;;  %v950_v32 = vsel %vm758_vm10, %v544_v18, %v854_v24  ;;  %999 = vst.msk [vmem:[%s2013_s3 + $0x90] sm:$0xff] %vm980_vm0, %v902_v31  ;;  %vm713_vm11 = vcmp.ge.f32.partialorder %v319_v27, 0.0  ;;  %v809_v37 = vmul.f32 0.1, %v319_v27  ;;  %vm761_vm12 = vcmp.ge.f32.partialorder %v559_v28, 0.0 }
 0x136   :  { %1047 = vst.msk [vmem:[%s2013_s3 + $0x210] sm:$0xff] %vm980_vm0, %v950_v32  ;;  %v857_v38 = vmul.f32 0.1, %v559_v28  ;;  %vm712_vm13 = vcmp.ge.f32.partialorder %v314_v33, 0.0  ;;  %v808_v39 = vmul.f32 0.1, %v314_v33  ;;  %v329_v43 = vadd.f32 %v1262_v35, %v1533_v56 }
 0x137   :  { %vm760_vm14 = vcmp.ge.f32.partialorder %v554_v34, 0.0  ;;  %v856_v40 = vmul.f32 0.1, %v554_v34  ;;  %v905_v41 = vsel %vm713_vm11, %v319_v27, %v809_v37  ;;  %v569_v44 = vadd.f32 %v1334_v36, %v1533_v56  ;;  %v323_v45 = vpop.f32.mrb[23].mxu0  ;;  %v563_v46 = vpop.f32.mrb[23].mxu1 }
 0x138   :  { %v953_v42 = vsel %vm761_vm12, %v559_v28, %v857_v38  ;;  %1002 = vst.msk [vmem:[%s2013_s3 + $0xa8] sm:$0xff] %vm980_vm0, %v905_v41  ;;  %v904_v47 = vsel %vm712_vm13, %v314_v33, %v808_v39  ;;  %v324_v49 = vadd.f32 %v1533_v56, %v323_v45  ;;  %v564_v50 = vadd.f32 %v1533_v56, %v563_v46  ;;  %v1265_v51 = vpop.f32.mrb[24].mxu0  ;;  %v1337_v52 = vpop.f32.mrb[24].mxu1 }
 0x139   :  { %1050 = vst.msk [vmem:[%s2013_s3 + $0x228] sm:$0xff] %vm980_vm0, %v953_v42  ;;  %v952_v48 = vsel %vm760_vm14, %v554_v34, %v856_v40  ;;  %1001 = vst.msk [vmem:[%s2013_s3 + $0xa0] sm:$0xff] %vm980_vm0, %v904_v47  ;;  %vm715_vm15 = vcmp.ge.f32.partialorder %v329_v43, 0.0  ;;  %v811_v53 = vmul.f32 0.1, %v329_v43  ;;  %vm763_vm1 = vcmp.ge.f32.partialorder %v569_v44, 0.0 }
 0x13a   :  { %1049 = vst.msk [vmem:[%s2013_s3 + $0x220] sm:$0xff] %vm980_vm0, %v952_v48  ;;  %v859_v54 = vmul.f32 0.1, %v569_v44  ;;  %vm714_vm2 = vcmp.ge.f32.partialorder %v324_v49, 0.0  ;;  %v810_v55 = vmul.f32 0.1, %v324_v49  ;;  %v339_v60 = vadd.f32 %v1265_v51, %v1533_v56 }
 0x13b   :  { %vm762_vm3 = vcmp.ge.f32.partialorder %v564_v50, 0.0  ;;  %v858_v57 = vmul.f32 0.1, %v564_v50  ;;  %v907_v58 = vsel %vm715_vm15, %v329_v43, %v811_v53  ;;  %v579_v61 = vadd.f32 %v1337_v52, %v1533_v56  ;;  %v333_v62 = vpop.f32.mrb[25].mxu0  ;;  %v573_v63 = vpop.f32.mrb[25].mxu1 }
 0x13c   :  { %v955_v59 = vsel %vm763_vm1, %v569_v44, %v859_v54  ;;  %1004 = vst.msk [vmem:[%s2013_s3 + $0xb8] sm:$0xff] %vm980_vm0, %v907_v58  ;;  %v906_v0 = vsel %vm714_vm2, %v324_v49, %v810_v55  ;;  %v334_v2 = vadd.f32 %v1533_v56, %v333_v62  ;;  %v574_v3 = vadd.f32 %v1533_v56, %v573_v63  ;;  %v1268_v4 = vpop.f32.mrb[26].mxu0  ;;  %v1340_v5 = vpop.f32.mrb[26].mxu1 }
 0x13d   :  { %1052 = vst.msk [vmem:[%s2013_s3 + $0x238] sm:$0xff] %vm980_vm0, %v955_v59  ;;  %v954_v1 = vsel %vm762_vm3, %v564_v50, %v858_v57  ;;  %1003 = vst.msk [vmem:[%s2013_s3 + $0xb0] sm:$0xff] %vm980_vm0, %v906_v0  ;;  %vm717_vm4 = vcmp.ge.f32.partialorder %v339_v60, 0.0  ;;  %v813_v6 = vmul.f32 0.1, %v339_v60  ;;  %vm765_vm5 = vcmp.ge.f32.partialorder %v579_v61, 0.0 }
 0x13e   :  { %1051 = vst.msk [vmem:[%s2013_s3 + $0x230] sm:$0xff] %vm980_vm0, %v954_v1  ;;  %v861_v7 = vmul.f32 0.1, %v579_v61  ;;  %vm716_vm6 = vcmp.ge.f32.partialorder %v334_v2, 0.0  ;;  %v812_v8 = vmul.f32 0.1, %v334_v2  ;;  %v349_v12 = vadd.f32 %v1268_v4, %v1533_v56 }
 0x13f   :  { %vm764_vm7 = vcmp.ge.f32.partialorder %v574_v3, 0.0  ;;  %v860_v9 = vmul.f32 0.1, %v574_v3  ;;  %v909_v10 = vsel %vm717_vm4, %v339_v60, %v813_v6  ;;  %v589_v13 = vadd.f32 %v1340_v5, %v1533_v56  ;;  %v343_v14 = vpop.f32.mrb[27].mxu0  ;;  %v583_v15 = vpop.f32.mrb[27].mxu1 }
 0x140   :  { %v957_v11 = vsel %vm765_vm5, %v579_v61, %v861_v7  ;;  %1006 = vst.msk [vmem:[%s2013_s3 + $0xc8] sm:$0xff] %vm980_vm0, %v909_v10  ;;  %v908_v16 = vsel %vm716_vm6, %v334_v2, %v812_v8  ;;  %v344_v18 = vadd.f32 %v1533_v56, %v343_v14  ;;  %v584_v19 = vadd.f32 %v1533_v56, %v583_v15  ;;  %v1271_v20 = vpop.f32.mrb[28].mxu0  ;;  %v1343_v21 = vpop.f32.mrb[28].mxu1 }
 0x141   :  { %1054 = vst.msk [vmem:[%s2013_s3 + $0x248] sm:$0xff] %vm980_vm0, %v957_v11  ;;  %v956_v17 = vsel %vm764_vm7, %v574_v3, %v860_v9  ;;  %1005 = vst.msk [vmem:[%s2013_s3 + $0xc0] sm:$0xff] %vm980_vm0, %v908_v16  ;;  %vm719_vm8 = vcmp.ge.f32.partialorder %v349_v12, 0.0  ;;  %v815_v22 = vmul.f32 0.1, %v349_v12  ;;  %vm767_vm9 = vcmp.ge.f32.partialorder %v589_v13, 0.0 }
 0x142   :  { %1053 = vst.msk [vmem:[%s2013_s3 + $0x240] sm:$0xff] %vm980_vm0, %v956_v17  ;;  %v863_v23 = vmul.f32 0.1, %v589_v13  ;;  %vm718_vm10 = vcmp.ge.f32.partialorder %v344_v18, 0.0  ;;  %v814_v24 = vmul.f32 0.1, %v344_v18  ;;  %v359_v28 = vadd.f32 %v1271_v20, %v1533_v56 }
 0x143   :  { %vm766_vm11 = vcmp.ge.f32.partialorder %v584_v19, 0.0  ;;  %v862_v25 = vmul.f32 0.1, %v584_v19  ;;  %v911_v26 = vsel %vm719_vm8, %v349_v12, %v815_v22  ;;  %v599_v29 = vadd.f32 %v1343_v21, %v1533_v56  ;;  %v353_v30 = vpop.f32.mrb[29].mxu0  ;;  %v593_v31 = vpop.f32.mrb[29].mxu1 }
 0x144   :  { %v959_v27 = vsel %vm767_vm9, %v589_v13, %v863_v23  ;;  %1008 = vst.msk [vmem:[%s2013_s3 + $0xd8] sm:$0xff] %vm980_vm0, %v911_v26  ;;  %v910_v32 = vsel %vm718_vm10, %v344_v18, %v814_v24  ;;  %v354_v34 = vadd.f32 %v1533_v56, %v353_v30  ;;  %v594_v35 = vadd.f32 %v1533_v56, %v593_v31  ;;  %v1274_v36 = vpop.f32.mrb[30].mxu0  ;;  %v1346_v37 = vpop.f32.mrb[30].mxu1 }
 0x145   :  { %1056 = vst.msk [vmem:[%s2013_s3 + $0x258] sm:$0xff] %vm980_vm0, %v959_v27  ;;  %v958_v33 = vsel %vm766_vm11, %v584_v19, %v862_v25  ;;  %1007 = vst.msk [vmem:[%s2013_s3 + $0xd0] sm:$0xff] %vm980_vm0, %v910_v32  ;;  %vm721_vm12 = vcmp.ge.f32.partialorder %v359_v28, 0.0  ;;  %v817_v38 = vmul.f32 0.1, %v359_v28  ;;  %vm769_vm13 = vcmp.ge.f32.partialorder %v599_v29, 0.0 }
 0x146   :  { %1055 = vst.msk [vmem:[%s2013_s3 + $0x250] sm:$0xff] %vm980_vm0, %v958_v33  ;;  %v865_v39 = vmul.f32 0.1, %v599_v29  ;;  %vm720_vm14 = vcmp.ge.f32.partialorder %v354_v34, 0.0  ;;  %v816_v40 = vmul.f32 0.1, %v354_v34  ;;  %v369_v44 = vadd.f32 %v1274_v36, %v1533_v56 }
 0x147   :  { %vm768_vm15 = vcmp.ge.f32.partialorder %v594_v35, 0.0  ;;  %v864_v41 = vmul.f32 0.1, %v594_v35  ;;  %v913_v42 = vsel %vm721_vm12, %v359_v28, %v817_v38  ;;  %v609_v45 = vadd.f32 %v1346_v37, %v1533_v56  ;;  %v363_v46 = vpop.f32.mrb[31].mxu0  ;;  %v603_v47 = vpop.f32.mrb[31].mxu1 }
 0x148   :  { %v961_v43 = vsel %vm769_vm13, %v599_v29, %v865_v39  ;;  %1010 = vst.msk [vmem:[%s2013_s3 + $0xe8] sm:$0xff] %vm980_vm0, %v913_v42  ;;  %v912_v48 = vsel %vm720_vm14, %v354_v34, %v816_v40  ;;  %v364_v50 = vadd.f32 %v1533_v56, %v363_v46  ;;  %v604_v51 = vadd.f32 %v1533_v56, %v603_v47  ;;  %v1277_v52 = vpop.f32.mrb[32].mxu0  ;;  %v1349_v53 = vpop.f32.mrb[32].mxu1 }
 0x149   :  { %1058 = vst.msk [vmem:[%s2013_s3 + $0x268] sm:$0xff] %vm980_vm0, %v961_v43  ;;  %v960_v49 = vsel %vm768_vm15, %v594_v35, %v864_v41  ;;  %1009 = vst.msk [vmem:[%s2013_s3 + $0xe0] sm:$0xff] %vm980_vm0, %v912_v48  ;;  %vm723_vm1 = vcmp.ge.f32.partialorder %v369_v44, 0.0  ;;  %v819_v54 = vmul.f32 0.1, %v369_v44  ;;  %vm771_vm2 = vcmp.ge.f32.partialorder %v609_v45, 0.0 }
 0x14a   :  { %1057 = vst.msk [vmem:[%s2013_s3 + $0x260] sm:$0xff] %vm980_vm0, %v960_v49  ;;  %v867_v55 = vmul.f32 0.1, %v609_v45  ;;  %vm722_vm3 = vcmp.ge.f32.partialorder %v364_v50, 0.0  ;;  %v818_v57 = vmul.f32 0.1, %v364_v50  ;;  %v379_v61 = vadd.f32 %v1277_v52, %v1533_v56 }
 0x14b   :  { %vm770_vm4 = vcmp.ge.f32.partialorder %v604_v51, 0.0  ;;  %v866_v58 = vmul.f32 0.1, %v604_v51  ;;  %v915_v59 = vsel %vm723_vm1, %v369_v44, %v819_v54  ;;  %v619_v62 = vadd.f32 %v1349_v53, %v1533_v56  ;;  %v373_v63 = vpop.f32.mrb[33].mxu0  ;;  %v613_v0 = vpop.f32.mrb[33].mxu1 }
 0x14c   :  { %v963_v60 = vsel %vm771_vm2, %v609_v45, %v867_v55  ;;  %1012 = vst.msk [vmem:[%s2013_s3 + $0xf8] sm:$0xff] %vm980_vm0, %v915_v59  ;;  %v914_v1 = vsel %vm722_vm3, %v364_v50, %v818_v57  ;;  %v374_v3 = vadd.f32 %v1533_v56, %v373_v63  ;;  %v614_v4 = vadd.f32 %v1533_v56, %v613_v0  ;;  %v1280_v5 = vpop.f32.mrb[34].mxu0  ;;  %v1352_v6 = vpop.f32.mrb[34].mxu1 }
 0x14d   :  { %1060 = vst.msk [vmem:[%s2013_s3 + $0x278] sm:$0xff] %vm980_vm0, %v963_v60  ;;  %v962_v2 = vsel %vm770_vm4, %v604_v51, %v866_v58  ;;  %1011 = vst.msk [vmem:[%s2013_s3 + $0xf0] sm:$0xff] %vm980_vm0, %v914_v1  ;;  %vm725_vm5 = vcmp.ge.f32.partialorder %v379_v61, 0.0  ;;  %v821_v7 = vmul.f32 0.1, %v379_v61  ;;  %vm773_vm6 = vcmp.ge.f32.partialorder %v619_v62, 0.0 }
 0x14e   :  { %1059 = vst.msk [vmem:[%s2013_s3 + $0x270] sm:$0xff] %vm980_vm0, %v962_v2  ;;  %v869_v8 = vmul.f32 0.1, %v619_v62  ;;  %vm724_vm7 = vcmp.ge.f32.partialorder %v374_v3, 0.0  ;;  %v820_v9 = vmul.f32 0.1, %v374_v3  ;;  %v389_v13 = vadd.f32 %v1280_v5, %v1533_v56 }
 0x14f   :  { %vm772_vm8 = vcmp.ge.f32.partialorder %v614_v4, 0.0  ;;  %v868_v10 = vmul.f32 0.1, %v614_v4  ;;  %v917_v11 = vsel %vm725_vm5, %v379_v61, %v821_v7  ;;  %v629_v14 = vadd.f32 %v1352_v6, %v1533_v56  ;;  %v383_v15 = vpop.f32.mrb[35].mxu0  ;;  %v623_v16 = vpop.f32.mrb[35].mxu1 }
 0x150   :  { %v965_v12 = vsel %vm773_vm6, %v619_v62, %v869_v8  ;;  %1014 = vst.msk [vmem:[%s2013_s3 + $0x108] sm:$0xff] %vm980_vm0, %v917_v11  ;;  %v916_v17 = vsel %vm724_vm7, %v374_v3, %v820_v9  ;;  %v384_v19 = vadd.f32 %v1533_v56, %v383_v15  ;;  %v624_v20 = vadd.f32 %v1533_v56, %v623_v16  ;;  %v1283_v21 = vpop.f32.mrb[36].mxu0  ;;  %v1355_v22 = vpop.f32.mrb[36].mxu1 }
 0x151   :  { %1062 = vst.msk [vmem:[%s2013_s3 + $0x288] sm:$0xff] %vm980_vm0, %v965_v12  ;;  %v964_v18 = vsel %vm772_vm8, %v614_v4, %v868_v10  ;;  %1013 = vst.msk [vmem:[%s2013_s3 + $0x100] sm:$0xff] %vm980_vm0, %v916_v17  ;;  %vm727_vm9 = vcmp.ge.f32.partialorder %v389_v13, 0.0  ;;  %v823_v23 = vmul.f32 0.1, %v389_v13  ;;  %vm775_vm10 = vcmp.ge.f32.partialorder %v629_v14, 0.0 }
 0x152   :  { %1061 = vst.msk [vmem:[%s2013_s3 + $0x280] sm:$0xff] %vm980_vm0, %v964_v18  ;;  %v871_v24 = vmul.f32 0.1, %v629_v14  ;;  %vm726_vm11 = vcmp.ge.f32.partialorder %v384_v19, 0.0  ;;  %v822_v25 = vmul.f32 0.1, %v384_v19  ;;  %v399_v29 = vadd.f32 %v1283_v21, %v1533_v56 }
 0x153   :  { %vm774_vm12 = vcmp.ge.f32.partialorder %v624_v20, 0.0  ;;  %v870_v26 = vmul.f32 0.1, %v624_v20  ;;  %v919_v27 = vsel %vm727_vm9, %v389_v13, %v823_v23  ;;  %v639_v30 = vadd.f32 %v1355_v22, %v1533_v56  ;;  %v393_v31 = vpop.f32.mrb[37].mxu0  ;;  %v633_v32 = vpop.f32.mrb[37].mxu1 }
 0x154   :  { %v967_v28 = vsel %vm775_vm10, %v629_v14, %v871_v24  ;;  %1016 = vst.msk [vmem:[%s2013_s3 + $0x118] sm:$0xff] %vm980_vm0, %v919_v27  ;;  %v918_v33 = vsel %vm726_vm11, %v384_v19, %v822_v25  ;;  %v394_v35 = vadd.f32 %v1533_v56, %v393_v31  ;;  %v634_v36 = vadd.f32 %v1533_v56, %v633_v32  ;;  %v1286_v37 = vpop.f32.mrb[38].mxu0  ;;  %v1358_v38 = vpop.f32.mrb[38].mxu1 }
 0x155   :  { %1064 = vst.msk [vmem:[%s2013_s3 + $0x298] sm:$0xff] %vm980_vm0, %v967_v28  ;;  %v966_v34 = vsel %vm774_vm12, %v624_v20, %v870_v26  ;;  %1015 = vst.msk [vmem:[%s2013_s3 + $0x110] sm:$0xff] %vm980_vm0, %v918_v33  ;;  %vm729_vm13 = vcmp.ge.f32.partialorder %v399_v29, 0.0  ;;  %v825_v39 = vmul.f32 0.1, %v399_v29  ;;  %vm777_vm14 = vcmp.ge.f32.partialorder %v639_v30, 0.0 }
 0x156   :  { %1063 = vst.msk [vmem:[%s2013_s3 + $0x290] sm:$0xff] %vm980_vm0, %v966_v34  ;;  %v873_v40 = vmul.f32 0.1, %v639_v30  ;;  %vm728_vm15 = vcmp.ge.f32.partialorder %v394_v35, 0.0  ;;  %v824_v41 = vmul.f32 0.1, %v394_v35  ;;  %v409_v45 = vadd.f32 %v1286_v37, %v1533_v56 }
 0x157   :  { %vm776_vm1 = vcmp.ge.f32.partialorder %v634_v36, 0.0  ;;  %v872_v42 = vmul.f32 0.1, %v634_v36  ;;  %v921_v43 = vsel %vm729_vm13, %v399_v29, %v825_v39  ;;  %v649_v46 = vadd.f32 %v1358_v38, %v1533_v56  ;;  %v403_v47 = vpop.f32.mrb[39].mxu0  ;;  %v643_v48 = vpop.f32.mrb[39].mxu1 }
 0x158   :  { %v969_v44 = vsel %vm777_vm14, %v639_v30, %v873_v40  ;;  %1018 = vst.msk [vmem:[%s2013_s3 + $0x128] sm:$0xff] %vm980_vm0, %v921_v43  ;;  %v920_v49 = vsel %vm728_vm15, %v394_v35, %v824_v41  ;;  %v404_v51 = vadd.f32 %v1533_v56, %v403_v47  ;;  %v644_v52 = vadd.f32 %v1533_v56, %v643_v48  ;;  %v1289_v53 = vpop.f32.mrb[40].mxu0  ;;  %v1361_v54 = vpop.f32.mrb[40].mxu1  ;;  %v1422_v29 = vld [vmem:[%s2012_s2] ss:$0 sm:$0xff] }
 0x159   :  { %1066 = vst.msk [vmem:[%s2013_s3 + $0x2a8] sm:$0xff] %vm980_vm0, %v969_v44  ;;  %v968_v50 = vsel %vm776_vm1, %v634_v36, %v872_v42  ;;  %1017 = vst.msk [vmem:[%s2013_s3 + $0x120] sm:$0xff] %vm980_vm0, %v920_v49  ;;  %vm731_vm2 = vcmp.ge.f32.partialorder %v409_v45, 0.0  ;;  %v827_v55 = vmul.f32 0.1, %v409_v45  ;;  %vm779_vm3 = vcmp.ge.f32.partialorder %v649_v46, 0.0 }
 0x15a   :  { %1065 = vst.msk [vmem:[%s2013_s3 + $0x2a0] sm:$0xff] %vm980_vm0, %v968_v50  ;;  %v875_v57 = vmul.f32 0.1, %v649_v46  ;;  %vm730_vm4 = vcmp.ge.f32.partialorder %v404_v51, 0.0  ;;  %v826_v58 = vmul.f32 0.1, %v404_v51  ;;  %v419_v62 = vadd.f32 %v1289_v53, %v1533_v56 }
 0x15b   :  { %vm778_vm5 = vcmp.ge.f32.partialorder %v644_v52, 0.0  ;;  %v874_v59 = vmul.f32 0.1, %v644_v52  ;;  %v923_v60 = vsel %vm731_vm2, %v409_v45, %v827_v55  ;;  %v659_v63 = vadd.f32 %v1361_v54, %v1533_v56  ;;  %v413_v0 = vpop.f32.mrb[41].mxu0  ;;  %v653_v1 = vpop.f32.mrb[41].mxu1 }
 0x15c   :  { %v971_v61 = vsel %vm779_vm3, %v649_v46, %v875_v57  ;;  %1020 = vst.msk [vmem:[%s2013_s3 + $0x138] sm:$0xff] %vm980_vm0, %v923_v60  ;;  %v922_v2 = vsel %vm730_vm4, %v404_v51, %v826_v58  ;;  %v414_v4 = vadd.f32 %v1533_v56, %v413_v0  ;;  %v654_v5 = vadd.f32 %v1533_v56, %v653_v1  ;;  %v1292_v6 = vpop.f32.mrb[42].mxu0  ;;  %v1364_v7 = vpop.f32.mrb[42].mxu1 }
 0x15d   :  { %1068 = vst.msk [vmem:[%s2013_s3 + $0x2b8] sm:$0xff] %vm980_vm0, %v971_v61  ;;  %v970_v3 = vsel %vm778_vm5, %v644_v52, %v874_v59  ;;  %1019 = vst.msk [vmem:[%s2013_s3 + $0x130] sm:$0xff] %vm980_vm0, %v922_v2  ;;  %vm733_vm6 = vcmp.ge.f32.partialorder %v419_v62, 0.0  ;;  %v829_v8 = vmul.f32 0.1, %v419_v62  ;;  %vm781_vm7 = vcmp.ge.f32.partialorder %v659_v63, 0.0 }
 0x15e   :  { %1067 = vst.msk [vmem:[%s2013_s3 + $0x2b0] sm:$0xff] %vm980_vm0, %v970_v3  ;;  %v877_v9 = vmul.f32 0.1, %v659_v63  ;;  %vm732_vm8 = vcmp.ge.f32.partialorder %v414_v4, 0.0  ;;  %v828_v10 = vmul.f32 0.1, %v414_v4  ;;  %v429_v14 = vadd.f32 %v1292_v6, %v1533_v56 }
 0x15f   :  { %vm780_vm9 = vcmp.ge.f32.partialorder %v654_v5, 0.0  ;;  %v876_v11 = vmul.f32 0.1, %v654_v5  ;;  %v925_v12 = vsel %vm733_vm6, %v419_v62, %v829_v8  ;;  %v669_v15 = vadd.f32 %v1364_v7, %v1533_v56  ;;  %v423_v16 = vpop.f32.mrb[43].mxu0  ;;  %v663_v17 = vpop.f32.mrb[43].mxu1 }
 0x160   :  { %v973_v13 = vsel %vm781_vm7, %v659_v63, %v877_v9  ;;  %1022 = vst.msk [vmem:[%s2013_s3 + $0x148] sm:$0xff] %vm980_vm0, %v925_v12  ;;  %v924_v18 = vsel %vm732_vm8, %v414_v4, %v828_v10  ;;  %v424_v20 = vadd.f32 %v1533_v56, %v423_v16  ;;  %v664_v21 = vadd.f32 %v1533_v56, %v663_v17  ;;  %v1295_v22 = vpop.f32.mrb[44].mxu0  ;;  %v1367_v23 = vpop.f32.mrb[44].mxu1 }
 0x161   :  { %1070 = vst.msk [vmem:[%s2013_s3 + $0x2c8] sm:$0xff] %vm980_vm0, %v973_v13  ;;  %v972_v19 = vsel %vm780_vm9, %v654_v5, %v876_v11  ;;  %1021 = vst.msk [vmem:[%s2013_s3 + $0x140] sm:$0xff] %vm980_vm0, %v924_v18  ;;  %vm735_vm10 = vcmp.ge.f32.partialorder %v429_v14, 0.0  ;;  %v831_v24 = vmul.f32 0.1, %v429_v14  ;;  %vm783_vm11 = vcmp.ge.f32.partialorder %v669_v15, 0.0 }
 0x162   :  { %1069 = vst.msk [vmem:[%s2013_s3 + $0x2c0] sm:$0xff] %vm980_vm0, %v972_v19  ;;  %v879_v25 = vmul.f32 0.1, %v669_v15  ;;  %vm734_vm12 = vcmp.ge.f32.partialorder %v424_v20, 0.0  ;;  %v830_v26 = vmul.f32 0.1, %v424_v20  ;;  %v439_v30 = vadd.f32 %v1422_v29, %v1295_v22 }
 0x163   :  { %vm782_vm13 = vcmp.ge.f32.partialorder %v664_v21, 0.0  ;;  %v878_v56 = vmul.f32 0.1, %v664_v21  ;;  %v927_v27 = vsel %vm735_vm10, %v429_v14, %v831_v24  ;;  %v679_v31 = vadd.f32 %v1422_v29, %v1367_v23  ;;  %v433_v32 = vpop.f32.mrb[45].mxu0  ;;  %v673_v33 = vpop.f32.mrb[45].mxu1 }
 0x164   :  { %v975_v28 = vsel %vm783_vm11, %v669_v15, %v879_v25  ;;  %1024 = vst.msk [vmem:[%s2013_s3 + $0x158] sm:$0xff] %vm980_vm0, %v927_v27  ;;  %v926_v34 = vsel %vm734_vm12, %v424_v20, %v830_v26  ;;  %v434_v36 = vadd.f32 %v1422_v29, %v433_v32  ;;  %v674_v37 = vadd.f32 %v1422_v29, %v673_v33  ;;  %v1298_v38 = vpop.f32.mrb[46].mxu0  ;;  %v1370_v39 = vpop.f32.mrb[46].mxu1 }
 0x165   :  { %1072 = vst.msk [vmem:[%s2013_s3 + $0x2d8] sm:$0xff] %vm980_vm0, %v975_v28  ;;  %v974_v35 = vsel %vm782_vm13, %v664_v21, %v878_v56  ;;  %1023 = vst.msk [vmem:[%s2013_s3 + $0x150] sm:$0xff] %vm980_vm0, %v926_v34  ;;  %vm737_vm14 = vcmp.ge.f32.partialorder %v439_v30, 0.0  ;;  %v833_v40 = vmul.f32 0.1, %v439_v30  ;;  %vm785_vm15 = vcmp.ge.f32.partialorder %v679_v31, 0.0 }
 0x166   :  { %1071 = vst.msk [vmem:[%s2013_s3 + $0x2d0] sm:$0xff] %vm980_vm0, %v974_v35  ;;  %v881_v41 = vmul.f32 0.1, %v679_v31  ;;  %vm736_vm1 = vcmp.ge.f32.partialorder %v434_v36, 0.0  ;;  %v832_v42 = vmul.f32 0.1, %v434_v36  ;;  %v449_v46 = vadd.f32 %v1422_v29, %v1298_v38 }
 0x167   :  { %vm784_vm2 = vcmp.ge.f32.partialorder %v674_v37, 0.0  ;;  %v880_v43 = vmul.f32 0.1, %v674_v37  ;;  %v929_v44 = vsel %vm737_vm14, %v439_v30, %v833_v40  ;;  %v689_v47 = vadd.f32 %v1422_v29, %v1370_v39  ;;  %v443_v48 = vpop.f32.mrb[47].mxu0  ;;  %v683_v49 = vpop.f32.mrb[47].mxu1 }
 0x168   :  { %v977_v45 = vsel %vm785_vm15, %v679_v31, %v881_v41  ;;  %1026 = vst.msk [vmem:[%s2013_s3 + $0x168] sm:$0xff] %vm980_vm0, %v929_v44  ;;  %v928_v50 = vsel %vm736_vm1, %v434_v36, %v832_v42  ;;  %v444_v52 = vadd.f32 %v1422_v29, %v443_v48  ;;  %v684_v53 = vadd.f32 %v1422_v29, %v683_v49 }
 0x169   :  { %1074 = vst.msk [vmem:[%s2013_s3 + $0x2e8] sm:$0xff] %vm980_vm0, %v977_v45  ;;  %v976_v51 = vsel %vm784_vm2, %v674_v37, %v880_v43  ;;  %1025 = vst.msk [vmem:[%s2013_s3 + $0x160] sm:$0xff] %vm980_vm0, %v928_v50  ;;  %vm739_vm3 = vcmp.ge.f32.partialorder %v449_v46, 0.0  ;;  %v835_v54 = vmul.f32 0.1, %v449_v46  ;;  %vm787_vm4 = vcmp.ge.f32.partialorder %v689_v47, 0.0 }
 0x16a   :  { %1073 = vst.msk [vmem:[%s2013_s3 + $0x2e0] sm:$0xff] %vm980_vm0, %v976_v51  ;;  %v883_v55 = vmul.f32 0.1, %v689_v47  ;;  %vm738_vm5 = vcmp.ge.f32.partialorder %v444_v52, 0.0  ;;  %v834_v57 = vmul.f32 0.1, %v444_v52 }
 0x16b   :  { %vm786_vm6 = vcmp.ge.f32.partialorder %v684_v53, 0.0  ;;  %v882_v58 = vmul.f32 0.1, %v684_v53  ;;  %v931_v59 = vsel %vm739_vm3, %v449_v46, %v835_v54 }
 0x16c   :  { %v979_v60 = vsel %vm787_vm4, %v689_v47, %v883_v55  ;;  %1028 = vst.msk [vmem:[%s2013_s3 + $0x178] sm:$0xff] %vm980_vm0, %v931_v59  ;;  %v930_v61 = vsel %vm738_vm5, %v444_v52, %v834_v57 }
 0x16d   :  { %1076 = vst.msk [vmem:[%s2013_s3 + $0x2f8] sm:$0xff] %vm980_vm0, %v979_v60  ;;  %v978_v62 = vsel %vm786_vm6, %v684_v53, %v882_v58  ;;  %1027 = vst.msk [vmem:[%s2013_s3 + $0x170] sm:$0xff] %vm980_vm0, %v930_v61 }
 0x16e   :  { %1075 = vst.msk [vmem:[%s2013_s3 + $0x2f0] sm:$0xff] %vm980_vm0, %v978_v62 }
 0x16f   :  { %1081 = vsyncpa [#allocation3], 1 }

</bundles_post_ra>
